<compile_context>
chip_gen: v6e
topology: v6e:2x2x1
jax: 0.10.0
libtpu: 0.0.40
codegen_flags: <defaults>
</compile_context>

<pallas_src>
import jax
import jax.numpy as jnp
from jax.experimental import pallas as pl
from jax.experimental.pallas import tpu as pltpu

_LANE = 128      # TPU lane width -> lane-dense padded output
_SUBLANE = 8     # sublane multiple for the fc1 contraction dim
_TB = 128        # batch rows per grid step (MXU-row friendly)


def _round_up(n, m):
    return ((n + m - 1) // m) * m


def _mlp_kernel(x_ref, w1_ref, b1_ref, w2_ref, b2_ref, w3_ref, b3_ref, o_ref):
    # fc1 + ReLU  (bf16 MXU operands, f32 accumulation, f32 epilogue)
    h = jnp.dot(x_ref[...], w1_ref[...], preferred_element_type=jnp.float32)
    h = jnp.maximum(h + b1_ref[...], 0.0)
    # fc2 + ReLU
    h = jnp.dot(h.astype(jnp.bfloat16), w2_ref[...],
                preferred_element_type=jnp.float32)
    h = jnp.maximum(h + b2_ref[...], 0.0)
    # fc3 (no activation); output block is lane-padded to 128 columns
    o = jnp.dot(h.astype(jnp.bfloat16), w3_ref[...],
                preferred_element_type=jnp.float32)
    o_ref[...] = (o + b3_ref[...]).astype(o_ref.dtype)


@jax.jit
def mlp_forward(x, w1, b1, w2, b2, w3, b3):
    """x: [B, input_dim] f32. Weights [in, out], biases [out] (PyTorch-equivalent math)."""
    B, d_in = x.shape
    hidden = w1.shape[1]
    d_out = w3.shape[1]

    # ---- pad to TPU-friendly shapes (zeros do not change the math) --------
    k1 = _round_up(max(d_in, 1), _SUBLANE)        # fc1 contraction dim
    n3 = _round_up(max(d_out, 1), _LANE)          # lane-dense output width
    bp = _round_up(max(B, 1), _TB)                # batch padded to tile

    xp = jnp.zeros((bp, k1), jnp.float32).at[:B, :d_in].set(x).astype(jnp.bfloat16)
    w1p = jnp.zeros((k1, hidden), jnp.float32).at[:d_in, :].set(w1).astype(jnp.bfloat16)
    w2p = w2.astype(jnp.bfloat16)
    w3p = jnp.zeros((hidden, n3), jnp.float32).at[:, :d_out].set(w3).astype(jnp.bfloat16)
    b1p = b1.reshape(1, hidden).astype(jnp.float32)
    b2p = b2.reshape(1, hidden).astype(jnp.float32)
    b3p = jnp.zeros((1, n3), jnp.float32).at[0, :d_out].set(b3.reshape(-1))

    grid = (pl.cdiv(bp, _TB),)

    out = pl.pallas_call(
        _mlp_kernel,
        out_shape=jax.ShapeDtypeStruct((bp, n3), jnp.float32),
        grid=grid,
        in_specs=[
            pl.BlockSpec((_TB, k1), lambda i: (i, 0)),       # x: batch-tiled
            pl.BlockSpec((k1, hidden), lambda i: (0, 0)),    # weights stay resident
            pl.BlockSpec((1, hidden), lambda i: (0, 0)),
            pl.BlockSpec((hidden, hidden), lambda i: (0, 0)),
            pl.BlockSpec((1, hidden), lambda i: (0, 0)),
            pl.BlockSpec((hidden, n3), lambda i: (0, 0)),
            pl.BlockSpec((1, n3), lambda i: (0, 0)),
        ],
        out_specs=pl.BlockSpec((_TB, n3), lambda i: (i, 0)),
        compiler_params=pltpu.CompilerParams(
            dimension_semantics=("parallel",)),
    )(xp, w1p, b1p, w2p, b2p, w3p, b3p)

    return out[:B, :d_out]


def init_mlp_params(key, input_dim, output_dim, hidden_dim=128):
    """Deterministic init mirroring nn.Linear default (U[-1/sqrt(fan_in), +])."""
    ks = jax.random.split(key, 6)

    def linear(kw, kb, fan_in, fan_out):
        bound = 1.0 / jnp.sqrt(float(fan_in))
        w = jax.random.uniform(kw, (fan_in, fan_out), jnp.float32, -bound, bound)
        b = jax.random.uniform(kb, (fan_out,), jnp.float32, -bound, bound)
        return w, b

    w1, b1 = linear(ks[0], ks[1], input_dim, hidden_dim)
    w2, b2 = linear(ks[2], ks[3], hidden_dim, hidden_dim)
    w3, b3 = linear(ks[4], ks[5], hidden_dim, output_dim)
    return w1, b1, w2, b2, w3, b3


if __name__ == "__main__":
    key = jax.random.PRNGKey(0)
    k_x, k_p = jax.random.split(key)

    batch = 256        # two batch tiles of 128 rows -> exercises the grid
    input_dim = 4      # e.g. CartPole-style state dim
    output_dim = 2     # action dim
    hidden_dim = 128   # module default

    x = jax.random.normal(k_x, (batch, input_dim), jnp.float32)
    params = init_mlp_params(k_p, input_dim, output_dim, hidden_dim)

    out = mlp_forward(x, *params)
    out = jax.block_until_ready(out)
    assert out.shape == (batch, output_dim)

    w1, b1, w2, b2, w3, b3 = params

    # Reference 1: same bf16-operand / f32-accum math in plain JAX (tight check).
    def ref_bf16(x, w1, b1, w2, b2, w3, b3):
        xb = x.astype(jnp.bfloat16)
        h = jnp.dot(xb, w1.astype(jnp.bfloat16),
                    preferred_element_type=jnp.float32) + b1
        h = jnp.maximum(h, 0.0)
        h = jnp.dot(h.astype(jnp.bfloat16), w2.astype(jnp.bfloat16),
                    preferred_element_type=jnp.float32) + b2
        h = jnp.maximum(h, 0.0)
        return jnp.dot(h.astype(jnp.bfloat16), w3.astype(jnp.bfloat16),
                       preferred_element_type=jnp.float32) + b3

    ref_b = ref_bf16(x, *params)
    assert jnp.allclose(out, ref_b, atol=2e-3, rtol=2e-3), \
        float(jnp.max(jnp.abs(out - ref_b)))

    # Reference 2: original f32 PyTorch-equivalent math (loose check, bf16 MXU path).
    ref_f = jnp.maximum(x @ w1 + b1, 0.0)
    ref_f = jnp.maximum(ref_f @ w2 + b2, 0.0)
    ref_f = ref_f @ w3 + b3
    assert jnp.allclose(out, ref_f, atol=1e-1, rtol=5e-2), \
        float(jnp.max(jnp.abs(out - ref_f)))

    print("KERNEL_OK")
</pallas_src>

<mosaic_0001>
module attributes {stable_mosaic.version = 11 : i64} {
  func.func @_mlp_kernel(%arg0: i32, %arg1: memref<128x8xbf16, #tpu.memory_space<vmem>>, %arg2: memref<8x128xbf16, #tpu.memory_space<vmem>>, %arg3: memref<1x128xf32, #tpu.memory_space<vmem>>, %arg4: memref<128x128xbf16, #tpu.memory_space<vmem>>, %arg5: memref<1x128xf32, #tpu.memory_space<vmem>>, %arg6: memref<128x128xbf16, #tpu.memory_space<vmem>>, %arg7: memref<1x128xf32, #tpu.memory_space<vmem>>, %arg8: memref<128x128xf32, #tpu.memory_space<vmem>>) attributes {dimension_semantics = [#tpu.dimension_semantics<parallel>], iteration_bounds = array<i64: 2>, scalar_prefetch = 0 : i64, scratch_operands = 0 : i64, tpu.core_type = #tpu.core_type<tc>, window_params = [{transform_indices = @transform_0, window_bounds = array<i64: 128, 8>}, {pipeline_mode = #tpu.pipeline_mode<synchronous>, transform_indices = @transform_1, window_bounds = array<i64: 8, 128>}, {pipeline_mode = #tpu.pipeline_mode<synchronous>, transform_indices = @transform_2, window_bounds = array<i64: 1, 128>}, {pipeline_mode = #tpu.pipeline_mode<synchronous>, transform_indices = @transform_3, window_bounds = array<i64: 128, 128>}, {pipeline_mode = #tpu.pipeline_mode<synchronous>, transform_indices = @transform_4, window_bounds = array<i64: 1, 128>}, {pipeline_mode = #tpu.pipeline_mode<synchronous>, transform_indices = @transform_5, window_bounds = array<i64: 128, 128>}, {pipeline_mode = #tpu.pipeline_mode<synchronous>, transform_indices = @transform_6, window_bounds = array<i64: 1, 128>}, {transform_indices = @transform_7, window_bounds = array<i64: 128, 128>}]} {
    %c0 = arith.constant 0 : index
    %c0_0 = arith.constant 0 : index
    %0 = vector.load %arg1[%c0, %c0_0] : memref<128x8xbf16, #tpu.memory_space<vmem>>, vector<128x8xbf16>
    %c0_1 = arith.constant 0 : index
    %c0_2 = arith.constant 0 : index
    %1 = vector.load %arg2[%c0_1, %c0_2] : memref<8x128xbf16, #tpu.memory_space<vmem>>, vector<8x128xbf16>
    %cst = arith.constant dense<0.000000e+00> : vector<128x128xf32>
    %2 = tpu.matmul %0, %1, %cst {dimension_numbers = #tpu.dot_dimension_numbers<[1], [0], [0], [1], [0, 0, 1, 1], [], []>} : vector<128x8xbf16>, vector<8x128xbf16>, vector<128x128xf32> -> vector<128x128xf32>
    %c0_3 = arith.constant 0 : index
    %c0_4 = arith.constant 0 : index
    %3 = vector.load %arg3[%c0_3, %c0_4] : memref<1x128xf32, #tpu.memory_space<vmem>>, vector<1x128xf32>
    %4 = vector.broadcast %3 : vector<1x128xf32> to vector<128x128xf32>
    %5 = arith.addf %2, %4 : vector<128x128xf32>
    %cst_5 = arith.constant 0.000000e+00 : f32
    %6 = vector.broadcast %cst_5 : f32 to vector<128x128xf32>
    %7 = arith.maximumf %5, %6 : vector<128x128xf32>
    %8 = arith.truncf %7 : vector<128x128xf32> to vector<128x128xbf16>
    %c0_6 = arith.constant 0 : index
    %c0_7 = arith.constant 0 : index
    %9 = vector.load %arg4[%c0_6, %c0_7] : memref<128x128xbf16, #tpu.memory_space<vmem>>, vector<128x128xbf16>
    %cst_8 = arith.constant dense<0.000000e+00> : vector<128x128xf32>
    %10 = tpu.matmul %8, %9, %cst_8 {dimension_numbers = #tpu.dot_dimension_numbers<[1], [0], [0], [1], [0, 0, 1, 1], [], []>} : vector<128x128xbf16>, vector<128x128xbf16>, vector<128x128xf32> -> vector<128x128xf32>
    %c0_9 = arith.constant 0 : index
    %c0_10 = arith.constant 0 : index
    %11 = vector.load %arg5[%c0_9, %c0_10] : memref<1x128xf32, #tpu.memory_space<vmem>>, vector<1x128xf32>
    %12 = vector.broadcast %11 : vector<1x128xf32> to vector<128x128xf32>
    %13 = arith.addf %10, %12 : vector<128x128xf32>
    %cst_11 = arith.constant 0.000000e+00 : f32
    %14 = vector.broadcast %cst_11 : f32 to vector<128x128xf32>
    %15 = arith.maximumf %13, %14 : vector<128x128xf32>
    %16 = arith.truncf %15 : vector<128x128xf32> to vector<128x128xbf16>
    %c0_12 = arith.constant 0 : index
    %c0_13 = arith.constant 0 : index
    %17 = vector.load %arg6[%c0_12, %c0_13] : memref<128x128xbf16, #tpu.memory_space<vmem>>, vector<128x128xbf16>
    %cst_14 = arith.constant dense<0.000000e+00> : vector<128x128xf32>
    %18 = tpu.matmul %16, %17, %cst_14 {dimension_numbers = #tpu.dot_dimension_numbers<[1], [0], [0], [1], [0, 0, 1, 1], [], []>} : vector<128x128xbf16>, vector<128x128xbf16>, vector<128x128xf32> -> vector<128x128xf32>
    %c0_15 = arith.constant 0 : index
    %c0_16 = arith.constant 0 : index
    %19 = vector.load %arg7[%c0_15, %c0_16] : memref<1x128xf32, #tpu.memory_space<vmem>>, vector<1x128xf32>
    %20 = vector.broadcast %19 : vector<1x128xf32> to vector<128x128xf32>
    %21 = arith.addf %18, %20 : vector<128x128xf32>
    %c0_17 = arith.constant 0 : index
    %c0_18 = arith.constant 0 : index
    %22 = vector.load %arg8[%c0_17, %c0_18] : memref<128x128xf32, #tpu.memory_space<vmem>>, vector<128x128xf32>
    tpu.vector_store %arg8[%c0_17, %c0_18], %21 {strides = array<i32>} : memref<128x128xf32, #tpu.memory_space<vmem>>, vector<128x128xf32>,
    return
  }
  func.func @transform_0(%arg0: i32) -> (i32, i32) {
    %c0_i32 = arith.constant 0 : i32
    %c0_i32_0 = arith.constant 0 : i32
    return %arg0, %c0_i32 : i32, i32
  }
  func.func @transform_1(%arg0: i32) -> (i32, i32) {
    %c0_i32 = arith.constant 0 : i32
    %c0_i32_0 = arith.constant 0 : i32
    %c0_i32_1 = arith.constant 0 : i32
    return %c0_i32, %c0_i32_0 : i32, i32
  }
  func.func @transform_2(%arg0: i32) -> (i32, i32) {
    %c0_i32 = arith.constant 0 : i32
    %c0_i32_0 = arith.constant 0 : i32
    %c0_i32_1 = arith.constant 0 : i32
    return %c0_i32, %c0_i32_0 : i32, i32
  }
  func.func @transform_3(%arg0: i32) -> (i32, i32) {
    %c0_i32 = arith.constant 0 : i32
    %c0_i32_0 = arith.constant 0 : i32
    %c0_i32_1 = arith.constant 0 : i32
    return %c0_i32, %c0_i32_0 : i32, i32
  }
  func.func @transform_4(%arg0: i32) -> (i32, i32) {
    %c0_i32 = arith.constant 0 : i32
    %c0_i32_0 = arith.constant 0 : i32
    %c0_i32_1 = arith.constant 0 : i32
    return %c0_i32, %c0_i32_0 : i32, i32
  }
  func.func @transform_5(%arg0: i32) -> (i32, i32) {
    %c0_i32 = arith.constant 0 : i32
    %c0_i32_0 = arith.constant 0 : i32
    %c0_i32_1 = arith.constant 0 : i32
    return %c0_i32, %c0_i32_0 : i32, i32
  }
  func.func @transform_6(%arg0: i32) -> (i32, i32) {
    %c0_i32 = arith.constant 0 : i32
    %c0_i32_0 = arith.constant 0 : i32
    %c0_i32_1 = arith.constant 0 : i32
    return %c0_i32, %c0_i32_0 : i32, i32
  }
  func.func @transform_7(%arg0: i32) -> (i32, i32) {
    %c0_i32 = arith.constant 0 : i32
    %c0_i32_0 = arith.constant 0 : i32
    return %arg0, %c0_i32 : i32, i32
  }
}

</mosaic_0001>

<bundles_post_ra>
// kernel: mlp_forward.1
= control target key start
LH: loop header
LB: loop body
LE: loop exit
PB: predicated region body
PF: predicated region fallthrough
CT: control target
= control target key end

     0   :  { %s1179_s24 = smov 0   ;;  %s1286_s0 = inlined_call_operand.vmem [shape: bf16[256,8], index: 0, kind: input, shape index: {}]   ;;  %s1287_s1 = inlined_call_operand.vmem [shape: bf16[8,128], index: 1, kind: input, shape index: {}]   ;;  %s1288_s2 = inlined_call_operand.vmem [shape: f32[1,128], index: 2, kind: input, shape index: {}]   ;;  %s1289_s3 = inlined_call_operand.vmem [shape: bf16[128,128], index: 3, kind: input, shape index: {}]   ;;  %s1290_s4 = inlined_call_operand.vmem [shape: f32[1,128], index: 4, kind: input, shape index: {}]   ;;  %s1291_s5 = inlined_call_operand.vmem [shape: bf16[128,128], index: 5, kind: input, shape index: {}]   ;;  %s1292_s6 = inlined_call_operand.vmem [shape: f32[1,128], index: 6, kind: input, shape index: {}]   ;;  %s1293_s7 = inlined_call_operand.vmem [shape: f32[256,128], index: 7, kind: output, shape index: {}]  }
   0x1 LB: > { %s929_s25 = sadd.s32 4294967295, %s1137_s24   ;;  %p933_p0 = scmp.ge.s32.totalorder %s1137_s24, 1  ;;  %s1137_s24 = sphi %s1179_s24, %s17_s24  }
   0x2   : > { %p238_p1 = scmp.lt.s32.totalorder %s1137_s24, 3 }
   0x4   : > { %p239_p2 = pnand %p933_p0, %p238_p1 }
   0x5   : > { %s934_s28 = sshll.u32 (!%p239_p2), %s929_s25, 4 }
   0x6   : > { %242 = sbr.rel (%p239_p2) target bundleno = 654 (0x28e), region = 48  ;;  %p271_p3 = scmp.lt.s32.totalorder (!%p239_p2), %s934_s28, 31 }
   0xb   : > { %v299_v0 = vld [vmem:[%s1287_s1] sm:$0xf]  ;;  %vm372_vm0 = vcmask 1043456   ;;  %v1115_v1 = vld [vmem:[%s1289_s3 + $0x38] sm:$0xff]   ;;  %v1116_v3 = vld [vmem:[%s1289_s3 + $0x30] sm:$0xff]   ;;  %s1295_s28 = smov (!%p271_p3, %s934_s28), 31 }
   0xc   : > { %1098 = vmatprep.subr.msk.bf16.mxu0 %vm372_vm0, %v299_v0  ;;  %v374_v2 = vsel %vm372_vm0, %v299_v0, 0  ;;  %1034 = vmatprep.subr.bf16.mxu1 %v1115_v1  ;;  %v1117_v4 = vld [vmem:[%s1289_s3 + $0x28] sm:$0xff]   ;;  %s935_s12 = sshll.u32 %s1295_s28, 2  ;;  %vm347_vm1 = vcmask 64512   ;;  %v1118_v5 = vld [vmem:[%s1289_s3 + $0x20] sm:$0xff]   ;;  %v1119_v9 = vld [vmem:[%s1289_s3 + $0x18] sm:$0xff]  }
   0xd   : > { %1017 = vmatpush3.bf16.msra.mxu0 %v374_v2  ;;  %1035 = vmatpush3.bf16.msra.mxu1 %v1115_v1  ;;  %s274_s15 = scalar_lea.vmem %s1286_s0, %s935_s12  ;;  %v1120_v15 = vld [vmem:[%s1289_s3 + $0x10] sm:$0xff]   ;;  %v1121_v16 = vld [vmem:[%s1289_s3 + $0x8] sm:$0xff]   ;;  %v1122_v17 = vld [vmem:[%s1289_s3] sm:$0xff]   ;;  %s937_s26 = sshll.u32 %s1295_s28, 3 }
   0xe   : > { %1036 = vmatprep.subr.bf16.mxu1 %v1116_v3  ;;  %v1107_v6 = vld [vmem:[%s274_s15] sm:$0xff]   ;;  %v1108_v7 = vld [vmem:[%s274_s15 + $0x8] sm:$0xff]   ;;  %v1109_v8 = vld [vmem:[%s274_s15 + $0x10] sm:$0xff]   ;;  %s1265_s9 = scalar_lea.vmem %s1293_s7, %s937_s26 }
   0xf   : > { %1018 = vmatprep.mubr.msk.bf16.mxu0 %vm347_vm1, %v1107_v6  ;;  %v1110_v10 = vld [vmem:[%s274_s15 + $0x18] sm:$0xff]   ;;  %v1111_v11 = vld [vmem:[%s274_s15 + $0x20] sm:$0xff]   ;;  %v1112_v12 = vld [vmem:[%s274_s15 + $0x28] sm:$0xff]  }
  0x10   : > { %1019 = vmatmul.mubr.msk.bf16.vlgmr.msra.gmra.mxu0 %vm347_vm1, %v1108_v7  ;;  %v1113_v13 = vld [vmem:[%s274_s15 + $0x30] sm:$0xff]   ;;  %v1114_v14 = vld [vmem:[%s274_s15 + $0x38] sm:$0xff]   ;;  %v1125_v20 = vld [vmem:[%s1291_s5 + $0x28] sm:$0xff]  }
  0x11   : > { %1037 = vmatpush3.bf16.msra.mxu1 %v1116_v3  ;;  %1022 = vmatprep.mubr.msk.bf16.mxu0 %vm347_vm1, %v1109_v8  ;;  %v1123_v18 = vld [vmem:[%s1291_s5 + $0x38] sm:$0xff]   ;;  %v1124_v19 = vld [vmem:[%s1291_s5 + $0x30] sm:$0xff]   ;;  %v1126_v21 = vld [vmem:[%s1291_s5 + $0x20] sm:$0xff]  }
  0x12   : > { %1038 = vmatprep.subr.bf16.mxu1 %v1117_v4  ;;  %1066 = vmatprep.subr.bf16.mxu0 %v1123_v18  ;;  %v1127_v22 = vld [vmem:[%s1291_s5 + $0x18] sm:$0xff]   ;;  %v938_v25 = vld [vmem:[%s1288_s2] ss:$0 sm:$0xff] }
  0x13   : > { %1067 = vmatpush3.bf16.msra.mxu0 %v1123_v18  ;;  %v1130_v18 = vld [vmem:[%s1291_s5] sm:$0xff]  }
  0x14   : > { %1068 = vmatprep.subr.bf16.mxu0 %v1124_v19 }
  0x15   : > { %1039 = vmatpush3.bf16.msra.mxu1 %v1117_v4 }
  0x16   : > { %1040 = vmatprep.subr.bf16.mxu1 %v1118_v5 }
  0x17   : > { %1069 = vmatpush3.bf16.msra.mxu0 %v1124_v19 }
  0x18   : > { %1023 = vmatmul.mubr.msk.bf16.gmra.mxu0 %vm347_vm1, %v1110_v10  ;;  %1070 = vmatprep.subr.bf16.mxu0 %v1125_v20 }
  0x19   : > { %1041 = vmatpush3.bf16.msra.mxu1 %v1118_v5  ;;  %1026 = vmatprep.mubr.msk.bf16.mxu0 %vm347_vm1, %v1111_v11 }
  0x1a   : > { %1042 = vmatprep.subr.bf16.mxu1 %v1119_v9 }
  0x1b   : > { %1071 = vmatpush3.bf16.msra.mxu0 %v1125_v20 }
  0x1c   : > { %1072 = vmatprep.subr.bf16.mxu0 %v1126_v21 }
  0x1d   : > { %1043 = vmatpush3.bf16.msra.mxu1 %v1119_v9 }
  0x1e   : > { %1044 = vmatprep.subr.bf16.mxu1 %v1120_v15 }
  0x1f   : > { %1073 = vmatpush3.bf16.msra.mxu0 %v1126_v21  ;;  %v955_v21 = vld [vmem:[%s1290_s4] ss:$0 sm:$0xff] }
  0x20   : > { %1027 = vmatmul.mubr.msk.bf16.gmra.mxu0 %vm347_vm1, %v1112_v12  ;;  %1074 = vmatprep.subr.bf16.mxu0 %v1127_v22 }
  0x21   : > { %1030 = vmatprep.mubr.msk.bf16.mxu0 %vm347_vm1, %v1113_v13  ;;  %1045 = vmatpush3.bf16.msra.mxu1 %v1120_v15 }
  0x22   : > { %1046 = vmatprep.subr.bf16.mxu1 %v1121_v16 }
  0x23   : > { %1075 = vmatpush3.bf16.msra.mxu0 %v1127_v22 }
  0x25   : > { %1047 = vmatpush3.bf16.msra.mxu1 %v1121_v16  ;;  %v1128_v16 = vld [vmem:[%s1291_s5 + $0x10] sm:$0xff]  }
  0x26   : > { %1048 = vmatprep.subr.bf16.mxu1 %v1122_v17  ;;  %1076 = vmatprep.subr.bf16.mxu0 %v1128_v16 }
  0x27   : > { %1077 = vmatpush3.bf16.msra.mxu0 %v1128_v16 }
  0x28   : > { %1031 = vmatmul.mubr.msk.bf16.gmra.mxu0 %vm347_vm1, %v1114_v14 }
  0x29   : > { %1049 = vmatpush3.bf16.msra.mxu1 %v1122_v17  ;;  %v1129_v17 = vld [vmem:[%s1291_s5 + $0x8] sm:$0xff]  }
  0x2a   : > { %1078 = vmatprep.subr.bf16.mxu0 %v1129_v17 }
  0x2b   : > { %1079 = vmatpush3.bf16.msra.mxu0 %v1129_v17 }
  0x2c   : > { %1080 = vmatprep.subr.bf16.mxu0 %v1130_v18 }
  0x2f   : > { %1081 = vmatpush3.bf16.msra.mxu0 %v1130_v18 }
  0xd0   : > { %v1020_v23 = vpop.f32.mrf.mxu0 }
  0xd1   : > { %v419_v29 = vadd.f32 %v1020_v23, %v938_v25 }
  0xd2   : > { %v410_v24 = vpop.f32.mrf.mxu0 }
  0xd3   : > { %v411_v27 = vadd.f32 %v938_v25, %v410_v24  ;;  %v475_v36 = vmax.f32 %v419_v29, 0.0 }
  0xd4   : > { %v1021_v26 = vpop.f32.mrf.mxu0 }
  0xd5   : > { %v422_v28 = vadd.f32 %v1021_v26, %v938_v25  ;;  %v473_v34 = vmax.f32 %v411_v27, 0.0 }
  0xd6   : > { %v413_v30 = vpop.f32.mrf.mxu0 }
  0xd7   : > { %v414_v31 = vadd.f32 %v938_v25, %v413_v30  ;;  %v476_v32 = vmax.f32 %v422_v28, 0.0 }
  0xd8   : > { %v1024_v33 = vpop.f32.mrf.mxu0 }
  0xd9   : > { %v474_v35 = vmax.f32 %v414_v31, 0.0  ;;  %v490_v39 = vpack.c.bf16 %v476_v32, %v475_v36  ;;  %v435_v43 = vadd.f32 %v1024_v33, %v938_v25 }
  0xda   : > { %v426_v37 = vpop.f32.mrf.mxu0 }
  0xdb   : > { %v489_v38 = vpack.c.bf16 %v474_v35, %v473_v34  ;;  %v427_v41 = vadd.f32 %v938_v25, %v426_v37  ;;  %v479_v50 = vmax.f32 %v435_v43, 0.0 }
  0xdc   : > { %v1025_v40 = vpop.f32.mrf.mxu0 }
  0xdd   : > { %v438_v42 = vadd.f32 %v1025_v40, %v938_v25  ;;  %1050 = vmatprep.mubr.bf16.mxu1 %v489_v38  ;;  %v477_v48 = vmax.f32 %v427_v41, 0.0 }
  0xde   : > { %v429_v44 = vpop.f32.mrf.mxu0  ;;  %1051 = vmatmul.mubr.bf16.vlgmr.msra.gmra.mxu1 %v490_v39 }
  0xdf   : > { %v430_v45 = vadd.f32 %v938_v25, %v429_v44  ;;  %v480_v46 = vmax.f32 %v438_v42, 0.0 }
  0xe0   : > { %v1028_v47 = vpop.f32.mrf.mxu0 }
  0xe1   : > { %v478_v49 = vmax.f32 %v430_v45, 0.0  ;;  %v492_v53 = vpack.c.bf16 %v480_v46, %v479_v50  ;;  %v451_v57 = vadd.f32 %v1028_v47, %v938_v25 }
  0xe2   : > { %v442_v51 = vpop.f32.mrf.mxu0 }
  0xe3   : > { %v491_v52 = vpack.c.bf16 %v478_v49, %v477_v48  ;;  %v443_v55 = vadd.f32 %v938_v25, %v442_v51  ;;  %v483_v0 = vmax.f32 %v451_v57, 0.0 }
  0xe4   : > { %v1029_v54 = vpop.f32.mrf.mxu0 }
  0xe5   : > { %v454_v56 = vadd.f32 %v1029_v54, %v938_v25  ;;  %1054 = vmatprep.mubr.bf16.mxu1 %v491_v52  ;;  %v481_v62 = vmax.f32 %v443_v55, 0.0 }
  0xe6   : > { %v445_v58 = vpop.f32.mrf.mxu0  ;;  %1055 = vmatmul.mubr.bf16.gmra.mxu1 %v492_v53 }
  0xe7   : > { %v446_v59 = vadd.f32 %v938_v25, %v445_v58  ;;  %v484_v60 = vmax.f32 %v454_v56, 0.0 }
  0xe8   : > { %v1032_v61 = vpop.f32.mrf.mxu0 }
  0xe9   : > { %v482_v63 = vmax.f32 %v446_v59, 0.0  ;;  %v494_v3 = vpack.c.bf16 %v484_v60, %v483_v0  ;;  %v467_v7 = vadd.f32 %v1032_v61, %v938_v25 }
  0xea   : > { %v458_v1 = vpop.f32.mrf.mxu0 }
  0xeb   : > { %v493_v2 = vpack.c.bf16 %v482_v63, %v481_v62  ;;  %v459_v5 = vadd.f32 %v938_v25, %v458_v1  ;;  %v487_v13 = vmax.f32 %v467_v7, 0.0 }
  0xec   : > { %v1033_v4 = vpop.f32.mrf.mxu0 }
  0xed   : > { %v470_v6 = vadd.f32 %v1033_v4, %v938_v25  ;;  %1058 = vmatprep.mubr.bf16.mxu1 %v493_v2  ;;  %v485_v11 = vmax.f32 %v459_v5, 0.0 }
  0xee   : > { %v461_v8 = vpop.f32.mrf.mxu0  ;;  %1059 = vmatmul.mubr.bf16.gmra.mxu1 %v494_v3 }
  0xef   : > { %v462_v9 = vadd.f32 %v938_v25, %v461_v8  ;;  %v488_v10 = vmax.f32 %v470_v6, 0.0 }
  0xf1   : > { %v486_v12 = vmax.f32 %v462_v9, 0.0  ;;  %v496_v15 = vpack.c.bf16 %v488_v10, %v487_v13 }
  0xf3   : > { %v495_v14 = vpack.c.bf16 %v486_v12, %v485_v11  ;;  %v964_v12 = vld [vmem:[%s1292_s6] ss:$0 sm:$0xff] }
  0xf5   : > { %1062 = vmatprep.mubr.bf16.mxu1 %v495_v14 }
  0xf6   : > { %1063 = vmatmul.mubr.bf16.gmra.mxu1 %v496_v15 }
 0x19e   : > { %v1052_v19 = vpop.f32.mrf.mxu1 }
 0x19f   : > { %v611_v25 = vadd.f32 %v1052_v19, %v955_v21 }
 0x1a0   : > { %v602_v20 = vpop.f32.mrf.mxu1 }
 0x1a1   : > { %v603_v23 = vadd.f32 %v955_v21, %v602_v20  ;;  %v667_v32 = vmax.f32 %v611_v25, 0.0 }
 0x1a2   : > { %v1053_v22 = vpop.f32.mrf.mxu1 }
 0x1a3   : > { %v614_v24 = vadd.f32 %v1053_v22, %v955_v21  ;;  %v665_v30 = vmax.f32 %v603_v23, 0.0 }
 0x1a4   : > { %v605_v26 = vpop.f32.mrf.mxu1 }
 0x1a5   : > { %v606_v27 = vadd.f32 %v955_v21, %v605_v26  ;;  %v668_v28 = vmax.f32 %v614_v24, 0.0 }
 0x1a6   : > { %v1056_v29 = vpop.f32.mrf.mxu1 }
 0x1a7   : > { %v666_v31 = vmax.f32 %v606_v27, 0.0  ;;  %v682_v35 = vpack.c.bf16 %v668_v28, %v667_v32  ;;  %v627_v39 = vadd.f32 %v1056_v29, %v955_v21 }
 0x1a8   : > { %v618_v33 = vpop.f32.mrf.mxu1 }
 0x1a9   : > { %v681_v34 = vpack.c.bf16 %v666_v31, %v665_v30  ;;  %v619_v37 = vadd.f32 %v955_v21, %v618_v33  ;;  %v671_v46 = vmax.f32 %v627_v39, 0.0 }
 0x1aa   : > { %v1057_v36 = vpop.f32.mrf.mxu1 }
 0x1ab   : > { %v630_v38 = vadd.f32 %v1057_v36, %v955_v21  ;;  %1082 = vmatprep.mubr.bf16.mxu0 %v681_v34  ;;  %v669_v44 = vmax.f32 %v619_v37, 0.0 }
 0x1ac   : > { %v621_v40 = vpop.f32.mrf.mxu1  ;;  %1083 = vmatmul.mubr.bf16.vlgmr.msra.gmra.mxu0 %v682_v35 }
 0x1ad   : > { %v622_v41 = vadd.f32 %v955_v21, %v621_v40  ;;  %v672_v42 = vmax.f32 %v630_v38, 0.0 }
 0x1ae   : > { %v1060_v43 = vpop.f32.mrf.mxu1 }
 0x1af   : > { %v670_v45 = vmax.f32 %v622_v41, 0.0  ;;  %v684_v49 = vpack.c.bf16 %v672_v42, %v671_v46  ;;  %v643_v53 = vadd.f32 %v1060_v43, %v955_v21 }
 0x1b0   : > { %v634_v47 = vpop.f32.mrf.mxu1 }
 0x1b1   : > { %v683_v48 = vpack.c.bf16 %v670_v45, %v669_v44  ;;  %v635_v51 = vadd.f32 %v955_v21, %v634_v47  ;;  %v675_v60 = vmax.f32 %v643_v53, 0.0 }
 0x1b2   : > { %v1061_v50 = vpop.f32.mrf.mxu1 }
 0x1b3   : > { %v646_v52 = vadd.f32 %v1061_v50, %v955_v21  ;;  %1086 = vmatprep.mubr.bf16.mxu0 %v683_v48  ;;  %v673_v58 = vmax.f32 %v635_v51, 0.0 }
 0x1b4   : > { %v637_v54 = vpop.f32.mrf.mxu1  ;;  %1087 = vmatmul.mubr.bf16.gmra.mxu0 %v684_v49 }
 0x1b5   : > { %v638_v55 = vadd.f32 %v955_v21, %v637_v54  ;;  %v676_v56 = vmax.f32 %v646_v52, 0.0 }
 0x1b6   : > { %v1064_v57 = vpop.f32.mrf.mxu1 }
 0x1b7   : > { %v674_v59 = vmax.f32 %v638_v55, 0.0  ;;  %v686_v63 = vpack.c.bf16 %v676_v56, %v675_v60  ;;  %v659_v3 = vadd.f32 %v1064_v57, %v955_v21 }
 0x1b8   : > { %v650_v61 = vpop.f32.mrf.mxu1 }
 0x1b9   : > { %v685_v62 = vpack.c.bf16 %v674_v59, %v673_v58  ;;  %v651_v1 = vadd.f32 %v955_v21, %v650_v61  ;;  %v679_v9 = vmax.f32 %v659_v3, 0.0 }
 0x1ba   : > { %v1065_v0 = vpop.f32.mrf.mxu1 }
 0x1bb   : > { %v662_v2 = vadd.f32 %v1065_v0, %v955_v21  ;;  %1090 = vmatprep.mubr.bf16.mxu0 %v685_v62  ;;  %v677_v7 = vmax.f32 %v651_v1, 0.0 }
 0x1bc   : > { %v653_v4 = vpop.f32.mrf.mxu1  ;;  %1091 = vmatmul.mubr.bf16.gmra.mxu0 %v686_v63 }
 0x1bd   : > { %v654_v5 = vadd.f32 %v955_v21, %v653_v4  ;;  %v680_v6 = vmax.f32 %v662_v2, 0.0 }
 0x1bf   : > { %v678_v8 = vmax.f32 %v654_v5, 0.0  ;;  %v688_v11 = vpack.c.bf16 %v680_v6, %v679_v9 }
 0x1c1   : > { %v687_v10 = vpack.c.bf16 %v678_v8, %v677_v7 }
 0x1c3   : > { %1094 = vmatprep.mubr.bf16.mxu0 %v687_v10 }
 0x1c4   : > { %1095 = vmatmul.mubr.bf16.gmra.mxu0 %v688_v11 }
 0x26c   : > { %v1084_v13 = vpop.f32.mrf.mxu0 }
 0x26d   : > { %v803_v14 = vadd.f32 %v1084_v13, %v964_v12 }
 0x26e   : > { %v794_v15 = vpop.f32.mrf.mxu0 }
 0x26f   : > { %859 = vst [vmem:[%s1265_s9 + $0x10] sm:$0xff] %v803_v14  ;;  %v795_v16 = vadd.f32 %v964_v12, %v794_v15 }
 0x270   : > { %v1085_v17 = vpop.f32.mrf.mxu0 }
 0x271   : > { %857 = vst [vmem:[%s1265_s9] sm:$0xff] %v795_v16  ;;  %v806_v18 = vadd.f32 %v1085_v17, %v964_v12 }
 0x272   : > { %v797_v19 = vpop.f32.mrf.mxu0 }
 0x273   : > { %860 = vst [vmem:[%s1265_s9 + $0x18] sm:$0xff] %v806_v18  ;;  %v798_v20 = vadd.f32 %v964_v12, %v797_v19 }
 0x274   : > { %v1088_v21 = vpop.f32.mrf.mxu0 }
 0x275   : > { %858 = vst [vmem:[%s1265_s9 + $0x8] sm:$0xff] %v798_v20  ;;  %v819_v22 = vadd.f32 %v1088_v21, %v964_v12 }
 0x276   : > { %v810_v23 = vpop.f32.mrf.mxu0 }
 0x277   : > { %863 = vst [vmem:[%s1265_s9 + $0x30] sm:$0xff] %v819_v22  ;;  %v811_v24 = vadd.f32 %v964_v12, %v810_v23 }
 0x278   : > { %v1089_v25 = vpop.f32.mrf.mxu0 }
 0x279   : > { %861 = vst [vmem:[%s1265_s9 + $0x20] sm:$0xff] %v811_v24  ;;  %v822_v26 = vadd.f32 %v1089_v25, %v964_v12 }
 0x27a   : > { %v813_v27 = vpop.f32.mrf.mxu0 }
 0x27b   : > { %864 = vst [vmem:[%s1265_s9 + $0x38] sm:$0xff] %v822_v26  ;;  %v814_v28 = vadd.f32 %v964_v12, %v813_v27 }
 0x27c   : > { %v1092_v29 = vpop.f32.mrf.mxu0 }
 0x27d   : > { %862 = vst [vmem:[%s1265_s9 + $0x28] sm:$0xff] %v814_v28  ;;  %v835_v30 = vadd.f32 %v1092_v29, %v964_v12 }
 0x27e   : > { %v826_v31 = vpop.f32.mrf.mxu0 }
 0x27f   : > { %867 = vst [vmem:[%s1265_s9 + $0x50] sm:$0xff] %v835_v30  ;;  %v827_v32 = vadd.f32 %v964_v12, %v826_v31 }
 0x280   : > { %v1093_v33 = vpop.f32.mrf.mxu0 }
 0x281   : > { %865 = vst [vmem:[%s1265_s9 + $0x40] sm:$0xff] %v827_v32  ;;  %v838_v34 = vadd.f32 %v1093_v33, %v964_v12 }
 0x282   : > { %v829_v35 = vpop.f32.mrf.mxu0 }
 0x283   : > { %868 = vst [vmem:[%s1265_s9 + $0x58] sm:$0xff] %v838_v34  ;;  %v830_v36 = vadd.f32 %v964_v12, %v829_v35 }
 0x284   : > { %v1096_v37 = vpop.f32.mrf.mxu0 }
 0x285   : > { %866 = vst [vmem:[%s1265_s9 + $0x48] sm:$0xff] %v830_v36  ;;  %v851_v38 = vadd.f32 %v1096_v37, %v964_v12 }
 0x286   : > { %v842_v39 = vpop.f32.mrf.mxu0 }
 0x287   : > { %871 = vst [vmem:[%s1265_s9 + $0x70] sm:$0xff] %v851_v38  ;;  %v843_v40 = vadd.f32 %v964_v12, %v842_v39 }
 0x288   : > { %v1097_v41 = vpop.f32.mrf.mxu0 }
 0x289   : > { %869 = vst [vmem:[%s1265_s9 + $0x60] sm:$0xff] %v843_v40  ;;  %v854_v42 = vadd.f32 %v1097_v41, %v964_v12 }
 0x28a   : > { %v845_v43 = vpop.f32.mrf.mxu0 }
 0x28b   : > { %872 = vst [vmem:[%s1265_s9 + $0x78] sm:$0xff] %v854_v42  ;;  %v846_v44 = vadd.f32 %v964_v12, %v845_v43 }
 0x28d   : > { %870 = vst [vmem:[%s1265_s9 + $0x68] sm:$0xff] %v846_v44 }
 0x28e PF: > { %s17_s24 = sadd.s32 1, %s1137_s24  }
 0x28f   : > { %p14_p4 = scmp.ge.s32.totalorder %s17_s24, 4  }
 0x291   :  { %16 = sbr.rel (!%p14_p4) target bundleno = 1 (0x1), region = 78 }

</bundles_post_ra>
